<compile_context>
chip_gen: v6e
topology: v6e:2x2x1
jax: 0.10.0
libtpu: 0.0.40
codegen_flags: <defaults>
</compile_context>

<pallas_src>
import functools

import jax
import jax.numpy as jnp
from jax.experimental import pallas as pl
from jax.experimental.pallas import tpu as pltpu

N_LAYERS = 4


def _round_up(v, m):
    return ((v + m - 1) // m) * m


def _sdf_kernel(w_ref, x_ref, o_ref, *, n_layers):
    # w_ref: SMEM (n_layers*9 + 3,) f32   -- PyTorch (out, in) row-major flatten
    # x_ref: VMEM (3, TS, 128) f32        -- planar point slabs
    # o_ref: VMEM (TS, 128) f32
    n_w = n_layers * 9 + 3
    # Read every weight scalar once, up front (JAX does not CSE the implicit
    # scalar->vreg broadcasts, so keep them out of the unrolled FMA chain).
    w = [w_ref[i] for i in range(n_w)]

    x0 = x_ref[0]  # (TS, 128)
    x1 = x_ref[1]
    x2 = x_ref[2]

    # Hidden layers: y[out] = relu(sum_in W[out, in] * x[in])  (9 FMAs each).
    for l in range(n_layers):  # static Python int -> fully unrolled
        b = l * 9
        y0 = w[b + 0] * x0 + w[b + 1] * x1 + w[b + 2] * x2
        y1 = w[b + 3] * x0 + w[b + 4] * x1 + w[b + 5] * x2
        y2 = w[b + 6] * x0 + w[b + 7] * x1 + w[b + 8] * x2
        x0 = jnp.maximum(y0, 0.0)
        x1 = jnp.maximum(y1, 0.0)
        x2 = jnp.maximum(y2, 0.0)

    # Output head: Linear(3, 1, bias=False)
    b = n_layers * 9
    o_ref[...] = w[b + 0] * x0 + w[b + 1] * x1 + w[b + 2] * x2


def _choose_ts(nb, ts_target):
    """Pick the slab tile (rows of 128 points) per grid step."""
    if nb <= 8:
        return nb  # tiny input: single full-extent block (allowed by (8,128) rule)
    if nb <= ts_target:
        # Split into >= 2 blocks so both v7x TensorCores get work.
        return max(8, _round_up(pl.cdiv(nb, 2), 8))
    return ts_target


def _sdf_forward_planar(xt, w_flat, n_layers, tn):
    """xt: (3, padded_n) planar points with padded_n a multiple of 128."""
    padded_n = xt.shape[1]
    nb = padded_n // 128
    xs = xt.reshape(3, nb, 128)

    ts_target = max(8, (tn // 128 // 8) * 8)
    ts = _choose_ts(nb, ts_target)
    grid = (pl.cdiv(nb, ts),)

    kernel = functools.partial(_sdf_kernel, n_layers=n_layers)

    out = pl.pallas_call(
        kernel,
        out_shape=jax.ShapeDtypeStruct((nb, 128), jnp.float32),
        grid_spec=pltpu.PrefetchScalarGridSpec(
            num_scalar_prefetch=1,
            grid=grid,
            in_specs=[
                pl.BlockSpec((3, ts, 128), lambda i, w: (0, i, 0)),
            ],
            out_specs=pl.BlockSpec((ts, 128), lambda i, w: (i, 0)),
        ),
        compiler_params=pltpu.CompilerParams(
            dimension_semantics=("parallel",),
        ),
    )(w_flat, xs)

    return out  # (nb, 128)


@functools.partial(jax.jit, static_argnames=("tn",))
def sdf_forward(x, hidden_weights, out_weight, *, tn=262144):
    """Pallas forward pass (jitted end-to-end so layout passes fuse).

    x:              (N, 3) float32
    hidden_weights: (n_layers, 3, 3) in PyTorch (out, in) layout
    out_weight:     (1, 3)           in PyTorch (out, in) layout
    tn:             target points per grid step (multiple of 1024)
    returns:        (N, 1) float32
    """
    n, d = x.shape
    assert d == 3
    n_layers = hidden_weights.shape[0]

    # Flatten all weight scalars into a 1-D SMEM table (PyTorch layout kept).
    w_flat = jnp.concatenate(
        [
            hidden_weights.astype(jnp.float32).reshape(-1),  # (n_layers*9,)
            out_weight.astype(jnp.float32).reshape(-1),      # (3,)
        ]
    )

    # Planar layout, padded only to a multiple of 128 (lane width).
    padded_n = _round_up(n, 128)
    xt = x.astype(jnp.float32).T                               # (3, N)
    if padded_n != n:
        xt = jnp.pad(xt, ((0, 0), (0, padded_n - n)))

    out = _sdf_forward_planar(xt, w_flat, n_layers, tn)        # (nb, 128)
    return out.reshape(-1)[:n].reshape(n, 1)


def sdf_reference(x, hidden_weights, out_weight):
    # Plain-JAX reference matching torch: h = relu(h @ W.T); out = h @ Wo.T
    h = x.astype(jnp.float32)
    for i in range(hidden_weights.shape[0]):
        h = jnp.maximum(h @ hidden_weights[i].T, 0.0)
    return h @ out_weight.T


if __name__ == "__main__":
    key = jax.random.PRNGKey(0)
    k_x, k_w, k_wo = jax.random.split(key, 3)

    batch = 200  # deliberately not a multiple of 128 to exercise lane padding

    x = jax.random.normal(k_x, (batch, 3), dtype=jnp.float32)
    hidden_weights = jax.random.uniform(
        k_w, (N_LAYERS, 3, 3), dtype=jnp.float32, minval=-0.5, maxval=0.5
    )  # each (out=3, in=3), PyTorch layout
    out_weight = jax.random.uniform(
        k_wo, (1, 3), dtype=jnp.float32, minval=-0.5, maxval=0.5
    )  # (out=1, in=3), PyTorch layout

    y = sdf_forward(x, hidden_weights, out_weight)
    y = jax.block_until_ready(y)

    y_ref = sdf_reference(x, hidden_weights, out_weight)
    assert y.shape == (batch, 1)
    assert jnp.allclose(y, y_ref, atol=1e-5, rtol=1e-5), "mismatch vs reference"

    print("KERNEL_OK")
</pallas_src>

<mosaic_0001>
module attributes {stable_mosaic.version = 11 : i64} {
  func.func @_sdf_kernel(%arg0: i32, %arg1: memref<39xf32, #tpu.memory_space<smem>>, %arg2: memref<3x2x128xf32, #tpu.memory_space<vmem>>, %arg3: memref<2x128xf32, #tpu.memory_space<vmem>>) attributes {dimension_semantics = [#tpu.dimension_semantics<parallel>], iteration_bounds = array<i64: 1>, scalar_prefetch = 1 : i64, scratch_operands = 0 : i64, tpu.core_type = #tpu.core_type<tc>, window_params = [{transform_indices = @transform_0, window_bounds = array<i64: 3, 2, 128>}, {transform_indices = @transform_1, window_bounds = array<i64: 2, 128>}]} {
    %c0 = arith.constant 0 : index
    %0 = memref.load %arg1[%c0] : memref<39xf32, #tpu.memory_space<smem>>
    %c1 = arith.constant 1 : index
    %1 = memref.load %arg1[%c1] : memref<39xf32, #tpu.memory_space<smem>>
    %c2 = arith.constant 2 : index
    %2 = memref.load %arg1[%c2] : memref<39xf32, #tpu.memory_space<smem>>
    %c3 = arith.constant 3 : index
    %3 = memref.load %arg1[%c3] : memref<39xf32, #tpu.memory_space<smem>>
    %c4 = arith.constant 4 : index
    %4 = memref.load %arg1[%c4] : memref<39xf32, #tpu.memory_space<smem>>
    %c5 = arith.constant 5 : index
    %5 = memref.load %arg1[%c5] : memref<39xf32, #tpu.memory_space<smem>>
    %c6 = arith.constant 6 : index
    %6 = memref.load %arg1[%c6] : memref<39xf32, #tpu.memory_space<smem>>
    %c7 = arith.constant 7 : index
    %7 = memref.load %arg1[%c7] : memref<39xf32, #tpu.memory_space<smem>>
    %c8 = arith.constant 8 : index
    %8 = memref.load %arg1[%c8] : memref<39xf32, #tpu.memory_space<smem>>
    %c9 = arith.constant 9 : index
    %9 = memref.load %arg1[%c9] : memref<39xf32, #tpu.memory_space<smem>>
    %c10 = arith.constant 10 : index
    %10 = memref.load %arg1[%c10] : memref<39xf32, #tpu.memory_space<smem>>
    %c11 = arith.constant 11 : index
    %11 = memref.load %arg1[%c11] : memref<39xf32, #tpu.memory_space<smem>>
    %c12 = arith.constant 12 : index
    %12 = memref.load %arg1[%c12] : memref<39xf32, #tpu.memory_space<smem>>
    %c13 = arith.constant 13 : index
    %13 = memref.load %arg1[%c13] : memref<39xf32, #tpu.memory_space<smem>>
    %c14 = arith.constant 14 : index
    %14 = memref.load %arg1[%c14] : memref<39xf32, #tpu.memory_space<smem>>
    %c15 = arith.constant 15 : index
    %15 = memref.load %arg1[%c15] : memref<39xf32, #tpu.memory_space<smem>>
    %c16 = arith.constant 16 : index
    %16 = memref.load %arg1[%c16] : memref<39xf32, #tpu.memory_space<smem>>
    %c17 = arith.constant 17 : index
    %17 = memref.load %arg1[%c17] : memref<39xf32, #tpu.memory_space<smem>>
    %c18 = arith.constant 18 : index
    %18 = memref.load %arg1[%c18] : memref<39xf32, #tpu.memory_space<smem>>
    %c19 = arith.constant 19 : index
    %19 = memref.load %arg1[%c19] : memref<39xf32, #tpu.memory_space<smem>>
    %c20 = arith.constant 20 : index
    %20 = memref.load %arg1[%c20] : memref<39xf32, #tpu.memory_space<smem>>
    %c21 = arith.constant 21 : index
    %21 = memref.load %arg1[%c21] : memref<39xf32, #tpu.memory_space<smem>>
    %c22 = arith.constant 22 : index
    %22 = memref.load %arg1[%c22] : memref<39xf32, #tpu.memory_space<smem>>
    %c23 = arith.constant 23 : index
    %23 = memref.load %arg1[%c23] : memref<39xf32, #tpu.memory_space<smem>>
    %c24 = arith.constant 24 : index
    %24 = memref.load %arg1[%c24] : memref<39xf32, #tpu.memory_space<smem>>
    %c25 = arith.constant 25 : index
    %25 = memref.load %arg1[%c25] : memref<39xf32, #tpu.memory_space<smem>>
    %c26 = arith.constant 26 : index
    %26 = memref.load %arg1[%c26] : memref<39xf32, #tpu.memory_space<smem>>
    %c27 = arith.constant 27 : index
    %27 = memref.load %arg1[%c27] : memref<39xf32, #tpu.memory_space<smem>>
    %c28 = arith.constant 28 : index
    %28 = memref.load %arg1[%c28] : memref<39xf32, #tpu.memory_space<smem>>
    %c29 = arith.constant 29 : index
    %29 = memref.load %arg1[%c29] : memref<39xf32, #tpu.memory_space<smem>>
    %c30 = arith.constant 30 : index
    %30 = memref.load %arg1[%c30] : memref<39xf32, #tpu.memory_space<smem>>
    %c31 = arith.constant 31 : index
    %31 = memref.load %arg1[%c31] : memref<39xf32, #tpu.memory_space<smem>>
    %c32 = arith.constant 32 : index
    %32 = memref.load %arg1[%c32] : memref<39xf32, #tpu.memory_space<smem>>
    %c33 = arith.constant 33 : index
    %33 = memref.load %arg1[%c33] : memref<39xf32, #tpu.memory_space<smem>>
    %c34 = arith.constant 34 : index
    %34 = memref.load %arg1[%c34] : memref<39xf32, #tpu.memory_space<smem>>
    %c35 = arith.constant 35 : index
    %35 = memref.load %arg1[%c35] : memref<39xf32, #tpu.memory_space<smem>>
    %c36 = arith.constant 36 : index
    %36 = memref.load %arg1[%c36] : memref<39xf32, #tpu.memory_space<smem>>
    %c37 = arith.constant 37 : index
    %37 = memref.load %arg1[%c37] : memref<39xf32, #tpu.memory_space<smem>>
    %c38 = arith.constant 38 : index
    %38 = memref.load %arg1[%c38] : memref<39xf32, #tpu.memory_space<smem>>
    %c0_0 = arith.constant 0 : index
    %c0_1 = arith.constant 0 : index
    %c0_2 = arith.constant 0 : index
    %39 = vector.load %arg2[%c0_0, %c0_1, %c0_2] : memref<3x2x128xf32, #tpu.memory_space<vmem>>, vector<1x2x128xf32>
    %40 = vector.shape_cast %39 : vector<1x2x128xf32> to vector<2x128xf32>
    %c1_3 = arith.constant 1 : index
    %c0_4 = arith.constant 0 : index
    %c0_5 = arith.constant 0 : index
    %41 = vector.load %arg2[%c1_3, %c0_4, %c0_5] : memref<3x2x128xf32, #tpu.memory_space<vmem>>, vector<1x2x128xf32>
    %42 = vector.shape_cast %41 : vector<1x2x128xf32> to vector<2x128xf32>
    %c2_6 = arith.constant 2 : index
    %c0_7 = arith.constant 0 : index
    %c0_8 = arith.constant 0 : index
    %43 = vector.load %arg2[%c2_6, %c0_7, %c0_8] : memref<3x2x128xf32, #tpu.memory_space<vmem>>, vector<1x2x128xf32>
    %44 = vector.shape_cast %43 : vector<1x2x128xf32> to vector<2x128xf32>
    %45 = vector.broadcast %0 : f32 to vector<2x128xf32>
    %46 = arith.mulf %45, %40 : vector<2x128xf32>
    %47 = vector.broadcast %1 : f32 to vector<2x128xf32>
    %48 = arith.mulf %47, %42 : vector<2x128xf32>
    %49 = arith.addf %46, %48 : vector<2x128xf32>
    %50 = vector.broadcast %2 : f32 to vector<2x128xf32>
    %51 = arith.mulf %50, %44 : vector<2x128xf32>
    %52 = arith.addf %49, %51 : vector<2x128xf32>
    %53 = vector.broadcast %3 : f32 to vector<2x128xf32>
    %54 = arith.mulf %53, %40 : vector<2x128xf32>
    %55 = vector.broadcast %4 : f32 to vector<2x128xf32>
    %56 = arith.mulf %55, %42 : vector<2x128xf32>
    %57 = arith.addf %54, %56 : vector<2x128xf32>
    %58 = vector.broadcast %5 : f32 to vector<2x128xf32>
    %59 = arith.mulf %58, %44 : vector<2x128xf32>
    %60 = arith.addf %57, %59 : vector<2x128xf32>
    %61 = vector.broadcast %6 : f32 to vector<2x128xf32>
    %62 = arith.mulf %61, %40 : vector<2x128xf32>
    %63 = vector.broadcast %7 : f32 to vector<2x128xf32>
    %64 = arith.mulf %63, %42 : vector<2x128xf32>
    %65 = arith.addf %62, %64 : vector<2x128xf32>
    %66 = vector.broadcast %8 : f32 to vector<2x128xf32>
    %67 = arith.mulf %66, %44 : vector<2x128xf32>
    %68 = arith.addf %65, %67 : vector<2x128xf32>
    %cst = arith.constant 0.000000e+00 : f32
    %69 = vector.broadcast %cst : f32 to vector<2x128xf32>
    %70 = arith.maximumf %52, %69 : vector<2x128xf32>
    %cst_9 = arith.constant 0.000000e+00 : f32
    %71 = vector.broadcast %cst_9 : f32 to vector<2x128xf32>
    %72 = arith.maximumf %60, %71 : vector<2x128xf32>
    %cst_10 = arith.constant 0.000000e+00 : f32
    %73 = vector.broadcast %cst_10 : f32 to vector<2x128xf32>
    %74 = arith.maximumf %68, %73 : vector<2x128xf32>
    %75 = vector.broadcast %9 : f32 to vector<2x128xf32>
    %76 = arith.mulf %75, %70 : vector<2x128xf32>
    %77 = vector.broadcast %10 : f32 to vector<2x128xf32>
    %78 = arith.mulf %77, %72 : vector<2x128xf32>
    %79 = arith.addf %76, %78 : vector<2x128xf32>
    %80 = vector.broadcast %11 : f32 to vector<2x128xf32>
    %81 = arith.mulf %80, %74 : vector<2x128xf32>
    %82 = arith.addf %79, %81 : vector<2x128xf32>
    %83 = vector.broadcast %12 : f32 to vector<2x128xf32>
    %84 = arith.mulf %83, %70 : vector<2x128xf32>
    %85 = vector.broadcast %13 : f32 to vector<2x128xf32>
    %86 = arith.mulf %85, %72 : vector<2x128xf32>
    %87 = arith.addf %84, %86 : vector<2x128xf32>
    %88 = vector.broadcast %14 : f32 to vector<2x128xf32>
    %89 = arith.mulf %88, %74 : vector<2x128xf32>
    %90 = arith.addf %87, %89 : vector<2x128xf32>
    %91 = vector.broadcast %15 : f32 to vector<2x128xf32>
    %92 = arith.mulf %91, %70 : vector<2x128xf32>
    %93 = vector.broadcast %16 : f32 to vector<2x128xf32>
    %94 = arith.mulf %93, %72 : vector<2x128xf32>
    %95 = arith.addf %92, %94 : vector<2x128xf32>
    %96 = vector.broadcast %17 : f32 to vector<2x128xf32>
    %97 = arith.mulf %96, %74 : vector<2x128xf32>
    %98 = arith.addf %95, %97 : vector<2x128xf32>
    %cst_11 = arith.constant 0.000000e+00 : f32
    %99 = vector.broadcast %cst_11 : f32 to vector<2x128xf32>
    %100 = arith.maximumf %82, %99 : vector<2x128xf32>
    %cst_12 = arith.constant 0.000000e+00 : f32
    %101 = vector.broadcast %cst_12 : f32 to vector<2x128xf32>
    %102 = arith.maximumf %90, %101 : vector<2x128xf32>
    %cst_13 = arith.constant 0.000000e+00 : f32
    %103 = vector.broadcast %cst_13 : f32 to vector<2x128xf32>
    %104 = arith.maximumf %98, %103 : vector<2x128xf32>
    %105 = vector.broadcast %18 : f32 to vector<2x128xf32>
    %106 = arith.mulf %105, %100 : vector<2x128xf32>
    %107 = vector.broadcast %19 : f32 to vector<2x128xf32>
    %108 = arith.mulf %107, %102 : vector<2x128xf32>
    %109 = arith.addf %106, %108 : vector<2x128xf32>
    %110 = vector.broadcast %20 : f32 to vector<2x128xf32>
    %111 = arith.mulf %110, %104 : vector<2x128xf32>
    %112 = arith.addf %109, %111 : vector<2x128xf32>
    %113 = vector.broadcast %21 : f32 to vector<2x128xf32>
    %114 = arith.mulf %113, %100 : vector<2x128xf32>
    %115 = vector.broadcast %22 : f32 to vector<2x128xf32>
    %116 = arith.mulf %115, %102 : vector<2x128xf32>
    %117 = arith.addf %114, %116 : vector<2x128xf32>
    %118 = vector.broadcast %23 : f32 to vector<2x128xf32>
    %119 = arith.mulf %118, %104 : vector<2x128xf32>
    %120 = arith.addf %117, %119 : vector<2x128xf32>
    %121 = vector.broadcast %24 : f32 to vector<2x128xf32>
    %122 = arith.mulf %121, %100 : vector<2x128xf32>
    %123 = vector.broadcast %25 : f32 to vector<2x128xf32>
    %124 = arith.mulf %123, %102 : vector<2x128xf32>
    %125 = arith.addf %122, %124 : vector<2x128xf32>
    %126 = vector.broadcast %26 : f32 to vector<2x128xf32>
    %127 = arith.mulf %126, %104 : vector<2x128xf32>
    %128 = arith.addf %125, %127 : vector<2x128xf32>
    %cst_14 = arith.constant 0.000000e+00 : f32
    %129 = vector.broadcast %cst_14 : f32 to vector<2x128xf32>
    %130 = arith.maximumf %112, %129 : vector<2x128xf32>
    %cst_15 = arith.constant 0.000000e+00 : f32
    %131 = vector.broadcast %cst_15 : f32 to vector<2x128xf32>
    %132 = arith.maximumf %120, %131 : vector<2x128xf32>
    %cst_16 = arith.constant 0.000000e+00 : f32
    %133 = vector.broadcast %cst_16 : f32 to vector<2x128xf32>
    %134 = arith.maximumf %128, %133 : vector<2x128xf32>
    %135 = vector.broadcast %27 : f32 to vector<2x128xf32>
    %136 = arith.mulf %135, %130 : vector<2x128xf32>
    %137 = vector.broadcast %28 : f32 to vector<2x128xf32>
    %138 = arith.mulf %137, %132 : vector<2x128xf32>
    %139 = arith.addf %136, %138 : vector<2x128xf32>
    %140 = vector.broadcast %29 : f32 to vector<2x128xf32>
    %141 = arith.mulf %140, %134 : vector<2x128xf32>
    %142 = arith.addf %139, %141 : vector<2x128xf32>
    %143 = vector.broadcast %30 : f32 to vector<2x128xf32>
    %144 = arith.mulf %143, %130 : vector<2x128xf32>
    %145 = vector.broadcast %31 : f32 to vector<2x128xf32>
    %146 = arith.mulf %145, %132 : vector<2x128xf32>
    %147 = arith.addf %144, %146 : vector<2x128xf32>
    %148 = vector.broadcast %32 : f32 to vector<2x128xf32>
    %149 = arith.mulf %148, %134 : vector<2x128xf32>
    %150 = arith.addf %147, %149 : vector<2x128xf32>
    %151 = vector.broadcast %33 : f32 to vector<2x128xf32>
    %152 = arith.mulf %151, %130 : vector<2x128xf32>
    %153 = vector.broadcast %34 : f32 to vector<2x128xf32>
    %154 = arith.mulf %153, %132 : vector<2x128xf32>
    %155 = arith.addf %152, %154 : vector<2x128xf32>
    %156 = vector.broadcast %35 : f32 to vector<2x128xf32>
    %157 = arith.mulf %156, %134 : vector<2x128xf32>
    %158 = arith.addf %155, %157 : vector<2x128xf32>
    %cst_17 = arith.constant 0.000000e+00 : f32
    %159 = vector.broadcast %cst_17 : f32 to vector<2x128xf32>
    %160 = arith.maximumf %142, %159 : vector<2x128xf32>
    %cst_18 = arith.constant 0.000000e+00 : f32
    %161 = vector.broadcast %cst_18 : f32 to vector<2x128xf32>
    %162 = arith.maximumf %150, %161 : vector<2x128xf32>
    %cst_19 = arith.constant 0.000000e+00 : f32
    %163 = vector.broadcast %cst_19 : f32 to vector<2x128xf32>
    %164 = arith.maximumf %158, %163 : vector<2x128xf32>
    %165 = vector.broadcast %36 : f32 to vector<2x128xf32>
    %166 = arith.mulf %165, %160 : vector<2x128xf32>
    %167 = vector.broadcast %37 : f32 to vector<2x128xf32>
    %168 = arith.mulf %167, %162 : vector<2x128xf32>
    %169 = arith.addf %166, %168 : vector<2x128xf32>
    %170 = vector.broadcast %38 : f32 to vector<2x128xf32>
    %171 = arith.mulf %170, %164 : vector<2x128xf32>
    %172 = arith.addf %169, %171 : vector<2x128xf32>
    %c0_20 = arith.constant 0 : index
    %c0_21 = arith.constant 0 : index
    %173 = vector.load %arg3[%c0_20, %c0_21] : memref<2x128xf32, #tpu.memory_space<vmem>>, vector<2x128xf32>
    tpu.vector_store %arg3[%c0_20, %c0_21], %172 {strides = array<i32>} : memref<2x128xf32, #tpu.memory_space<vmem>>, vector<2x128xf32>,
    return
  }
  func.func @transform_0(%arg0: i32, %arg1: memref<39xf32, #tpu.memory_space<smem>>) -> (i32, i32, i32) {
    %c0_i32 = arith.constant 0 : i32
    %c0_i32_0 = arith.constant 0 : i32
    %c0_i32_1 = arith.constant 0 : i32
    return %c0_i32, %arg0, %c0_i32_0 : i32, i32, i32
  }
  func.func @transform_1(%arg0: i32, %arg1: memref<39xf32, #tpu.memory_space<smem>>) -> (i32, i32) {
    %c0_i32 = arith.constant 0 : i32
    %c0_i32_0 = arith.constant 0 : i32
    return %arg0, %c0_i32 : i32, i32
  }
}

</mosaic_0001>

<bundles_post_ra>
// kernel: sdf_forward.1
= control target key start
LH: loop header
LB: loop body
LE: loop exit
PB: predicated region body
PF: predicated region fallthrough
CT: control target
= control target key end

     0   :  { %s358_s0 = inlined_call_operand.vmem [shape: f32[39], index: 0, kind: input, shape index: {}]   ;;  %s359_s1 = inlined_call_operand.vmem [shape: f32[3,2,128], index: 1, kind: input, shape index: {}]   ;;  %s360_s2 = inlined_call_operand.hbm [shape: f32[2,128], index: 2, kind: output, shape index: {}]  }
   0x1   :  { %s7_s11 = sshll.u32 %s358_s0, 4  ;;  %s8_s11 = int_to_ptr.vmem [resolvable:$true] %s7_s11 }
   0x2   :  { %s233_s12 = scalar_lea.vmem %s8_s11, 16  ;;  %p238_p1 = scmp.lt.s32.totalorder %s8_s11, %s8_s11 }
   0x3   :  { %p234_p0 = scmp.ne.s32.totalorder %s8_s11, %s233_s12  ;;  %p239_p2 = scmp.lt.s32.totalorder %s233_s12, %s233_s12 }
   0x5   :  { %p240_p3 = por %p239_p2, %p238_p1 }
   0x7   :  { %p241_p4 = pnand %p240_p3, %p234_p0 }
   0x9   :  { %244 = shalt.err (!%p241_p4)  }
   0xa   :  { %s269_s13 = smov [#allocation3]  }
   0xb   :  { %10 = dma.vmem_to_smem %s8_s11, 16, %s269_s13, [#allocation2] }
   0xc   :  { %265 = dma.done.wait [#allocation2], 16 }
   0xd   :  { %266 = vsyncadd [#allocation2], 4294967280 }
   0xe   :  { %12 = sfence }
   0xf   :  { %13 = vsyncpa [#allocation5], 0  ;;  %s16_s14 = sld [smem:[#allocation3]]  ;;  %v55_v0 = vld [vmem:[%s359_s1] sm:$0x3] }
  0x10   :  { %s191_s15 = sld [smem:[#allocation3 + $0x1]]  ;;  %v229_v1 = vld [vmem:[%s359_s1 + $0x2] sm:$0x3]  ;;  %v230_v2 = vld [vmem:[%s359_s1 + $0x4] sm:$0x3] }
  0x11   :  { %s192_s16 = sld [smem:[#allocation3 + $0x2]] }
  0x12   :  { %s193_s17 = sld [smem:[#allocation3 + $0x3]] }
  0x13   :  { %s194_s18 = sld [smem:[#allocation3 + $0x4]] }
  0x14   :  { %s195_s20 = sld [smem:[#allocation3 + $0x5]] }
  0x15   :  { %s196_s23 = sld [smem:[#allocation3 + $0x6]]  ;;  %v60_v3 = vstv %s16_s14 }
  0x16   :  { %s197_s26 = sld [smem:[#allocation3 + $0x7]]  ;;  %v61_v4 = vmul.f32 %v60_v3, %v55_v0  ;;  %v62_v5 = vstv %s191_s15 }
  0x17   :  { %s198_s27 = sld [smem:[#allocation3 + $0x8]]  ;;  %v63_v6 = vmul.f32 %v229_v1, %v62_v5  ;;  %v65_v7 = vstv %s192_s16 }
  0x18   :  { %s298_s28 = sld [smem:[#allocation3 + $0x9]]  ;;  %v66_v8 = vmul.f32 %v230_v2, %v65_v7  ;;  %v68_v9 = vstv %s193_s17 }
  0x19   :  { %s300_s29 = sld [smem:[#allocation3 + $0xa]]  ;;  %v64_v10 = vadd.f32 %v63_v6, %v61_v4  ;;  %v69_v11 = vmul.f32 %v68_v9, %v55_v0  ;;  %v70_v12 = vstv %s194_s18 }
  0x1a   :  { %s302_s30 = sld [smem:[#allocation3 + $0xb]]  ;;  %v71_v13 = vmul.f32 %v229_v1, %v70_v12  ;;  %v73_v14 = vstv %s195_s20 }
  0x1b   :  { %s202_s1 = sld [smem:[#allocation3 + $0xc]]  ;;  %v67_v15 = vadd.f32 %v66_v8, %v64_v10  ;;  %v74_v16 = vmul.f32 %v230_v2, %v73_v14  ;;  %v76_v17 = vstv %s196_s23 }
  0x1c   :  { %s203_s3 = sld [smem:[#allocation3 + $0xd]]  ;;  %v72_v18 = vadd.f32 %v71_v13, %v69_v11  ;;  %v77_v19 = vmul.f32 %v76_v17, %v55_v0  ;;  %v78_v20 = vstv %s197_s26 }
  0x1d   :  { %s304_s4 = sld [smem:[#allocation3 + $0xe]]  ;;  %v79_v21 = vmul.f32 %v229_v1, %v78_v20  ;;  %v81_v22 = vstv %s198_s27  ;;  %v84_v23 = vmax.f32 %v67_v15, 0.0 }
  0x1e   :  { %s205_s5 = sld [smem:[#allocation3 + $0xf]]  ;;  %v75_v24 = vadd.f32 %v74_v16, %v72_v18  ;;  %v82_v25 = vmul.f32 %v230_v2, %v81_v22  ;;  %v87_v26 = vstv %s298_s28  ;;  %s270_s28 = smov [#allocation4]  }
  0x1f   :  { %s307_s6 = sld [smem:[#allocation3 + $0x10]]  ;;  %v80_v27 = vadd.f32 %v79_v21, %v77_v19  ;;  %v89_v28 = vstv %s300_s29  ;;  %v88_v30 = vmul.f32 %v87_v26, %v84_v23  ;;  %s183_s29 = sshll.u32 %s270_s28, 4  ;;  %s184_s29 = int_to_ptr.vmem [resolvable:$true] %s183_s29 }
  0x20   :  { %s207_s7 = sld [smem:[#allocation3 + $0x11]]  ;;  %v85_v29 = vmax.f32 %v75_v24, 0.0  ;;  %v92_v34 = vstv %s302_s30  ;;  %s245_s30 = scalar_lea.vmem %s184_s29, 32 }
  0x21   :  { %s310_s8 = sld [smem:[#allocation3 + $0x12]]  ;;  %v83_v31 = vadd.f32 %v82_v25, %v80_v27  ;;  %v95_v32 = vstv %s202_s1  ;;  %p246_p5 = scmp.ne.s32.totalorder %s184_s29, %s245_s30 }
  0x22   :  { %s312_s9 = sld [smem:[#allocation3 + $0x13]]  ;;  %v90_v33 = vmul.f32 %v89_v28, %v85_v29  ;;  %v96_v35 = vmul.f32 %v95_v32, %v84_v23  ;;  %v97_v36 = vstv %s203_s3  ;;  %p250_p6 = scmp.lt.s32.totalorder %s184_s29, %s184_s29 }
  0x23   :  { %s315_s10 = sld [smem:[#allocation3 + $0x14]]  ;;  %v86_v37 = vmax.f32 %v83_v31, 0.0  ;;  %v98_v38 = vmul.f32 %v97_v36, %v85_v29  ;;  %v100_v39 = vstv %s304_s4  ;;  %p251_p7 = scmp.lt.s32.totalorder %s245_s30, %s245_s30 }
  0x24   :  { %s211_s11 = sld [smem:[#allocation3 + $0x15]]  ;;  %v91_v40 = vadd.f32 %v90_v33, %v88_v30  ;;  %v103_v41 = vstv %s205_s5 }
  0x25   :  { %s318_s12 = sld [smem:[#allocation3 + $0x16]]  ;;  %v93_v42 = vmul.f32 %v92_v34, %v86_v37  ;;  %v99_v43 = vadd.f32 %v98_v38, %v96_v35  ;;  %v101_v44 = vmul.f32 %v100_v39, %v86_v37  ;;  %v104_v45 = vmul.f32 %v103_v41, %v84_v23  ;;  %p252_p8 = por %p251_p7, %p250_p6 }
  0x26   :  { %s320_s13 = sld [smem:[#allocation3 + $0x17]]  ;;  %v105_v46 = vstv %s307_s6  ;;  %v108_v47 = vstv %s207_s7 }
  0x27   :  { %s214_s14 = sld [smem:[#allocation3 + $0x18]]  ;;  %v94_v48 = vadd.f32 %v93_v42, %v91_v40  ;;  %v102_v49 = vadd.f32 %v101_v44, %v99_v43  ;;  %v106_v50 = vmul.f32 %v105_v46, %v85_v29  ;;  %v109_v51 = vmul.f32 %v108_v47, %v86_v37  ;;  %p253_p9 = pnand %p252_p8, %p246_p5 }
  0x28   :  { %s215_s15 = sld [smem:[#allocation3 + $0x19]]  ;;  %v114_v52 = vstv %s310_s8  ;;  %v116_v53 = vstv %s312_s9 }
  0x29   :  { %s325_s16 = sld [smem:[#allocation3 + $0x1a]]  ;;  %v107_v54 = vadd.f32 %v106_v50, %v104_v45  ;;  %v111_v55 = vmax.f32 %v94_v48, 0.0  ;;  %v112_v56 = vmax.f32 %v102_v49, 0.0  ;;  %v119_v62 = vstv %s315_s10 }
  0x2a   :  { %s327_s17 = sld [smem:[#allocation3 + $0x1b]]  ;;  %v122_v57 = vstv %s211_s11 }
  0x2b   :  { %s329_s18 = sld [smem:[#allocation3 + $0x1c]]  ;;  %v110_v58 = vadd.f32 %v109_v51, %v107_v54  ;;  %v115_v59 = vmul.f32 %v114_v52, %v111_v55  ;;  %v117_v60 = vmul.f32 %v116_v53, %v112_v56  ;;  %v123_v61 = vmul.f32 %v122_v57, %v111_v55 }
  0x2c   :  { %s331_s0 = sld [smem:[#allocation3 + $0x1d]]  ;;  %v124_v63 = vstv %s318_s12  ;;  %v127_v0 = vstv %s320_s13 }
  0x2d   :  { %s336_s19 = sld [smem:[#allocation3 + $0x1e]]  ;;  %v113_v1 = vmax.f32 %v110_v58, 0.0  ;;  %v118_v2 = vadd.f32 %v117_v60, %v115_v59  ;;  %v125_v3 = vmul.f32 %v124_v63, %v112_v56  ;;  %v130_v4 = vstv %s214_s14 }
  0x2e   :  { %s338_s20 = sld [smem:[#allocation3 + $0x1f]]  ;;  %v131_v5 = vmul.f32 %v130_v4, %v111_v55  ;;  %v132_v6 = vstv %s215_s15 }
  0x2f   :  { %s340_s21 = sld [smem:[#allocation3 + $0x20]]  ;;  %v120_v7 = vmul.f32 %v119_v62, %v113_v1  ;;  %v126_v8 = vadd.f32 %v125_v3, %v123_v61  ;;  %v128_v9 = vmul.f32 %v127_v0, %v113_v1  ;;  %v133_v10 = vmul.f32 %v132_v6, %v112_v56 }
  0x30   :  { %s223_s22 = sld [smem:[#allocation3 + $0x21]]  ;;  %v135_v11 = vstv %s325_s16  ;;  %v141_v16 = vstv %s327_s17 }
  0x31   :  { %s343_s23 = sld [smem:[#allocation3 + $0x22]]  ;;  %v121_v12 = vadd.f32 %v120_v7, %v118_v2  ;;  %v129_v13 = vadd.f32 %v128_v9, %v126_v8  ;;  %v134_v14 = vadd.f32 %v133_v10, %v131_v5  ;;  %v136_v15 = vmul.f32 %v135_v11, %v113_v1 }
  0x32   :  { %s225_s24 = sld [smem:[#allocation3 + $0x23]]  ;;  %v143_v17 = vstv %s329_s18  ;;  %v146_v22 = vstv %s331_s0 }
  0x33   :  { %s347_s25 = sld [smem:[#allocation3 + $0x24]]  ;;  %v137_v18 = vadd.f32 %v136_v15, %v134_v14  ;;  %v138_v19 = vmax.f32 %v121_v12, 0.0  ;;  %v139_v20 = vmax.f32 %v129_v13, 0.0  ;;  %v149_v21 = vstv %s336_s19 }
  0x34   :  { %s227_s26 = sld [smem:[#allocation3 + $0x25]]  ;;  %v151_v23 = vstv %s338_s20 }
  0x35   :  { %v140_v24 = vmax.f32 %v137_v18, 0.0  ;;  %v142_v25 = vmul.f32 %v141_v16, %v138_v19  ;;  %v144_v26 = vmul.f32 %v143_v17, %v139_v20  ;;  %v150_v27 = vmul.f32 %v149_v21, %v138_v19  ;;  %s228_s27 = sld [smem:[#allocation3 + $0x26]] }
  0x36   :  { %v152_v28 = vmul.f32 %v151_v23, %v139_v20  ;;  %v154_v29 = vstv %s340_s21  ;;  %v157_v30 = vstv %s223_s22 }
  0x37   :  { %v145_v31 = vadd.f32 %v144_v26, %v142_v25  ;;  %v147_v32 = vmul.f32 %v146_v22, %v140_v24  ;;  %v155_v33 = vmul.f32 %v154_v29, %v140_v24  ;;  %v158_v34 = vmul.f32 %v157_v30, %v138_v19 }
  0x38   :  { %v153_v35 = vadd.f32 %v152_v28, %v150_v27  ;;  %v159_v36 = vstv %s343_s23  ;;  %v162_v37 = vstv %s225_s24 }
  0x39   :  { %v148_v38 = vadd.f32 %v147_v32, %v145_v31  ;;  %v160_v39 = vmul.f32 %v159_v36, %v139_v20  ;;  %v163_v40 = vmul.f32 %v162_v37, %v140_v24  ;;  %v168_v42 = vstv %s347_s25 }
  0x3a   :  { %v156_v41 = vadd.f32 %v155_v33, %v153_v35  ;;  %v170_v45 = vstv %s227_s26 }
  0x3b   :  { %v161_v43 = vadd.f32 %v160_v39, %v158_v34  ;;  %v165_v44 = vmax.f32 %v148_v38, 0.0  ;;  %v173_v50 = vstv %s228_s27 }
  0x3c   :  { %v166_v46 = vmax.f32 %v156_v41, 0.0 }
  0x3d   :  { %v164_v47 = vadd.f32 %v163_v40, %v161_v43  ;;  %v169_v48 = vmul.f32 %v168_v42, %v165_v44 }
  0x3e   :  { %v171_v49 = vmul.f32 %v170_v45, %v166_v46 }
  0x3f   :  { %v167_v51 = vmax.f32 %v164_v47, 0.0 }
  0x40   :  { %v172_v52 = vadd.f32 %v171_v49, %v169_v48 }
  0x41   :  { %v174_v53 = vmul.f32 %v173_v50, %v167_v51 }
  0x43   :  { %v175_v54 = vadd.f32 %v174_v53, %v172_v52 }
  0x45   :  { %176 = vst [vmem:[#allocation4] sm:$0x3] %v175_v54 }
  0x46   :  { %256 = shalt.err (!%p253_p9)
}
  0x47   :  { %186 = dma.vmem_to_hbm [thread:$0]  %s184_s29, 32, %s360_s2, [#allocation5]  }
  0x48   :  { %267 = dma.done.wait [#allocation5], 32  }
  0x49   :  { %268 = vsyncadd [#allocation5], 4294967264 }
  0x4a   :  { %190 = vsyncpa [#allocation5], 1 }

</bundles_post_ra>
